<compile_context>
chip_gen: v6e
topology: v6e:2x2x1
jax: 0.10.0
libtpu: 0.0.40
codegen_flags: <defaults>
</compile_context>

<pallas_src>
import functools

import numpy as np

import jax
import jax.numpy as jnp
from jax.experimental import pallas as pl
from jax.experimental.pallas import tpu as pltpu

EPS = 1e-5


def _round8(c: int) -> int:
    return ((c + 7) // 8) * 8


# ----------------------------------------------------------------------------
# Host-side precomputed constants (built once, numpy, lru_cached)
# ----------------------------------------------------------------------------
def _bilinear_matrix_1d(n: int) -> np.ndarray:
    """1-D interpolation matrix length-n -> length-2n, align_corners=True."""
    assert n >= 2
    out = 2 * n
    src = np.arange(out, dtype=np.float64) * (n - 1) / (out - 1)
    lo = np.clip(np.floor(src).astype(np.int64), 0, n - 2)
    frac = src - lo
    a = np.zeros((out, n), np.float64)
    a[np.arange(out), lo] += 1.0 - frac
    a[np.arange(out), lo + 1] += frac
    return a


@functools.lru_cache(maxsize=None)
def _upsample_matrix(h: int, w: int, batch: int):
    """Right-multiplication upsample operator: (batch*h*w, batch*4*h*w),
    block-diagonal over the batch (batch is folded into the lane axis)."""
    a_t = np.kron(_bilinear_matrix_1d(h), _bilinear_matrix_1d(w)).T  # (hw, 4hw)
    hw, hw4 = a_t.shape
    blk = np.zeros((batch * hw, batch * hw4), np.float32)
    for b in range(batch):
        blk[b * hw:(b + 1) * hw, b * hw4:(b + 1) * hw4] = a_t
    return jnp.asarray(blk)


@functools.lru_cache(maxsize=None)
def _roll_pull_direction() -> int:
    """Pin down the pltpu.roll shift convention with a tiny probe kernel.

    Returns dir such that pltpu.roll(x, (dir*off) % n, axis)[..., p] == x[..., p + off].
    """
    n = 256

    def kernel(x_ref, o_ref):
        o_ref[...] = pltpu.roll(x_ref[...], 1, axis=1)

    x = jnp.arange(8 * n, dtype=jnp.float32).reshape(8, n)
    vmem = pl.BlockSpec(memory_space=pltpu.MemorySpace.VMEM)
    y = pl.pallas_call(
        kernel,
        out_shape=jax.ShapeDtypeStruct((8, n), jnp.float32),
        in_specs=[vmem],
        out_specs=vmem,
    )(x)
    if bool(jnp.array_equal(y, jnp.roll(x, 1, axis=1))):
        return -1  # jnp.roll convention: out[p] = x[p - s]  -> use s = (-off) % n
    if bool(jnp.array_equal(y, jnp.roll(x, -1, axis=1))):
        return 1   # "pull" convention:   out[p] = x[p + s]  -> use s = (+off) % n
    return -1      # fall back to the jnp.roll convention


# ----------------------------------------------------------------------------
# The single fused kernel
# ----------------------------------------------------------------------------
def _aggregation_kernel(*refs, B, H1, W1, roll_dir):
    x1_ref, x2_ref, x3_ref, u8_ref, u16_ref = refs[:5]
    p = refs[5:-1]
    out_ref = refs[-1]

    H2, W2 = 2 * H1, 2 * W1
    H3, W3 = 4 * H1, 4 * W1

    # Trace-time caches: coordinates / border masks built once per (rows, resolution).
    coord_cache = {}
    mask_cache = {}

    def coords(rows, H, W):
        key = (rows, H, W)
        if key not in coord_cache:
            n = B * H * W
            idx = jax.lax.broadcasted_iota(jnp.int32, (rows, n), 1)
            xx = idx & (W - 1)                                   # = idx % W   (W power of 2)
            yy = (idx >> (W.bit_length() - 1)) & (H - 1)         # = (idx // W) % H
            coord_cache[key] = (xx, yy)
        return coord_cache[key]

    def tap_mask(rows, H, W, sy, sx):
        if sy == 0 and sx == 0:
            return None
        key = (rows, H, W, sy, sx)
        if key not in mask_cache:
            xx, yy = coords(rows, H, W)
            m = None

            def _and(a, b):
                return b if a is None else a & b

            if sx < 0:
                m = _and(m, xx >= -sx)
            if sx > 0:
                m = _and(m, xx <= W - 1 - sx)
            if sy < 0:
                m = _and(m, yy >= -sy)
            if sy > 0:
                m = _and(m, yy <= H - 1 - sy)
            mask_cache[key] = m
        return mask_cache[key]

    def im2col(x, H, W):
        # x: (rows, n) lane-major activation (n = B*H*W, flattened batch-major / row-major).
        # Returns a (9*rows, n) patch matrix; row block t = dy*3+dx holds the input sampled
        # at (y+dy-1, x+dx-1), zero outside the image (no cross-row / cross-batch leakage).
        rows, n = x.shape
        pieces = []
        for sy in (-1, 0, 1):
            for sx in (-1, 0, 1):
                off = sy * W + sx
                if off == 0:
                    shifted = x
                else:
                    # want shifted[:, p] == x[:, (p + off) % n]; invalid wraps get masked.
                    shifted = pltpu.roll(x, (roll_dir * off) % n, axis=1)
                m = tap_mask(rows, H, W, sy, sx)
                pieces.append(shifted if m is None else jnp.where(m, shifted, 0.0))
        return jnp.concatenate(pieces, axis=0)

    def conv_bn(groups, gamma_ref, beta_ref, H, W):
        # BasicConv2d: 3x3 conv (pad=1, no bias) -> ReLU -> BatchNorm2d (training stats).
        # `groups` = [(activation, packed_weight_ref), ...]; summing the group matmuls is
        # exactly conv(torch.cat(activations, dim=channel)) for the original weight.
        acc = None
        for x_g, w_ref in groups:
            part = jnp.dot(w_ref[...], im2col(x_g, H, W),
                           preferred_element_type=jnp.float32)
            acc = part if acc is None else acc + part
        y = jnp.maximum(acc, 0.0)                    # ReLU (applied before BN, as in the ref)
        inv_n = 1.0 / float(B * H * W)
        mean = jnp.sum(y, axis=1, keepdims=True) * inv_n
        ex2 = jnp.sum(y * y, axis=1, keepdims=True) * inv_n
        var = jnp.maximum(ex2 - mean * mean, 0.0)    # biased batch variance (training mode)
        scale = gamma_ref[...] * jax.lax.rsqrt(var + EPS)
        return y * scale + (beta_ref[...] - mean * scale)

    def up(x, u_ref):
        # bilinear x2 (align_corners=True) == right-matmul with the precomputed
        # per-batch block-diagonal Kronecker interpolation matrix (lane-dense output).
        return jnp.dot(x, u_ref[...], preferred_element_type=jnp.float32)

    (w_u1, g_u1, b_u1, w_u2, g_u2, b_u2, w_u3, g_u3, b_u3,
     w_u4, g_u4, b_u4, w_u5, g_u5, b_u5,
     w_c2a, w_c2b, g_c2, b_c2,
     w_c3a, w_c3b, g_c3, b_c3,
     w_c4, g_c4, b_c4, w5, b5) = p

    x1 = x1_ref[...]                    # (8,  B*H1*W1)
    x2 = x2_ref[...]                    # (8,  B*H2*W2)
    x3 = x3_ref[...]                    # (8,  B*H3*W3)

    x1_up = up(x1, u8_ref)              # (8,  B*H2*W2)
    x1_upup = up(x1_up, u16_ref)        # (8,  B*H3*W3)
    x2_up = up(x2, u16_ref)             # (8,  B*H3*W3)

    x2_1 = conv_bn([(x1_up, w_u1)], g_u1, b_u1, H2, W2) * x2
    x3_1 = (conv_bn([(x1_upup, w_u2)], g_u2, b_u2, H3, W3)
            * conv_bn([(x2_up, w_u3)], g_u3, b_u3, H3, W3)
            * x3)
    up4 = conv_bn([(x1_up, w_u4)], g_u4, b_u4, H2, W2)
    # conv_concat2(torch.cat([x2_1, up4], 1)) without materializing the concat:
    x2_2 = conv_bn([(x2_1, w_c2a), (up4, w_c2b)], g_c2, b_c2, H2, W2)        # (8,  n2)
    x2_2_up = up(x2_2, u16_ref)                                              # (8,  n3)
    up5 = conv_bn([(x2_2_up, w_u5)], g_u5, b_u5, H3, W3)                     # (8,  n3)
    # conv_concat3(torch.cat([x3_1, up5], 1)):
    x3_2 = conv_bn([(x3_1, w_c3a), (up5, w_c3b)], g_c3, b_c3, H3, W3)        # (16, n3)
    x4 = conv_bn([(x3_2, w_c4)], g_c4, b_c4, H3, W3)                         # (16, n3)
    # conv5: 1x1 conv with bias, Cout=1 -> lane-dense (1, B*H3*W3) row.
    out_ref[...] = jnp.dot(w5[...], x4, preferred_element_type=jnp.float32) + b5[...]


# ----------------------------------------------------------------------------
# Parameter init (PyTorch-shaped, deterministic) and host-side packing
# ----------------------------------------------------------------------------
def init_params(key, channel):
    keys = jax.random.split(key, 9)

    def basic(k, cin, cout):
        std = (2.0 / (cin * 9)) ** 0.5
        w = std * jax.random.normal(k, (3, 3, cin, cout), jnp.float32)   # HWIO
        return {"w": w,
                "gamma": jnp.ones((cout,), jnp.float32),     # BatchNorm2d default init
                "beta": jnp.zeros((cout,), jnp.float32)}

    C = channel
    p = {
        "conv_upsample1": basic(keys[0], C, C),
        "conv_upsample2": basic(keys[1], C, C),
        "conv_upsample3": basic(keys[2], C, C),
        "conv_upsample4": basic(keys[3], C, C),
        "conv_upsample5": basic(keys[4], 2 * C, 2 * C),
        "conv_concat2":   basic(keys[5], 2 * C, 2 * C),
        "conv_concat3":   basic(keys[6], 3 * C, 3 * C),
        "conv4":          basic(keys[7], 3 * C, 3 * C),
    }
    p["conv5_w"] = (1.0 / (3 * C)) ** 0.5 * jax.random.normal(
        keys[8], (3 * C, 1), jnp.float32)
    p["conv5_b"] = 0.01 * jnp.ones((1,), jnp.float32)
    return p


def _pack_conv_weight(w_hwio: np.ndarray, group_sizes):
    """Split a (3,3,Cin,Cout) HWIO conv weight by input-channel group and repack each group
    as (Cout_pad, 9*Gpad): column order is tap-major (dy*3+dx), channel-minor, with zero
    rows/columns for the 8-sublane padding. Matches the kernel's im2col row layout."""
    kh, kw, cin, cout = w_hwio.shape
    assert (kh, kw) == (3, 3) and sum(group_sizes) == cin
    cout_pad = _round8(cout)
    mats = []
    start = 0
    for g in group_sizes:
        gpad = _round8(g)
        wg = np.transpose(w_hwio[:, :, start:start + g, :], (3, 0, 1, 2))  # (cout,3,3,g)
        m = np.zeros((cout_pad, 9, gpad), np.float32)
        m[:cout, :, :g] = wg.reshape(cout, 9, g)
        mats.append(m.reshape(cout_pad, 9 * gpad))
        start += g
    return mats


def pack_params(params, channel):
    """Repack the PyTorch-shaped parameters into the padded, lane-major layout consumed by
    the fused kernel (done once, on the host, with numpy)."""
    C = channel

    def bconv(name, group_sizes):
        layer = params[name]
        w = np.asarray(layer["w"], np.float32)
        cout = w.shape[-1]
        cout_pad = _round8(cout)
        gamma = np.ones((cout_pad, 1), np.float32)   # pad rows: gamma=1 / beta=0 keep them 0
        beta = np.zeros((cout_pad, 1), np.float32)
        gamma[:cout, 0] = np.asarray(layer["gamma"], np.float32)
        beta[:cout, 0] = np.asarray(layer["beta"], np.float32)
        mats = _pack_conv_weight(w, group_sizes)
        return [jnp.asarray(m) for m in mats] + [jnp.asarray(gamma), jnp.asarray(beta)]

    flat = []
    flat += bconv("conv_upsample1", (C,))
    flat += bconv("conv_upsample2", (C,))
    flat += bconv("conv_upsample3", (C,))
    flat += bconv("conv_upsample4", (C,))
    flat += bconv("conv_upsample5", (2 * C,))
    flat += bconv("conv_concat2", (C, C))        # cat([x2_1, conv_upsample4(up(x1))])
    flat += bconv("conv_concat3", (C, 2 * C))    # cat([x3_1, conv_upsample5(up(x2_2))])
    flat += bconv("conv4", (3 * C,))
    w5 = np.zeros((1, _round8(3 * C)), np.float32)
    w5[0, :3 * C] = np.asarray(params["conv5_w"], np.float32).reshape(-1)
    b5 = np.asarray(params["conv5_b"], np.float32).reshape(1, 1)
    flat += [jnp.asarray(w5), jnp.asarray(b5)]
    return flat


# ----------------------------------------------------------------------------
# Forward pass wrapper
# ----------------------------------------------------------------------------
def _to_lane_major_padded(x):
    # (B, H, W, C) -> (Cpad, B*H*W): channels on sublanes (zero-padded to a multiple of 8),
    # flattened batch-major spatial index on the lane axis.
    b, h, w, c = x.shape
    xt = jnp.transpose(x, (3, 0, 1, 2)).reshape(c, b * h * w)
    cpad = _round8(c)
    if cpad != c:
        xt = jnp.pad(xt, ((0, cpad - c), (0, 0)))
    return xt


def aggregation_forward(packed_params, x1, x2, x3):
    B, H1, W1, C = x1.shape
    assert x2.shape == (B, 2 * H1, 2 * W1, C)
    assert x3.shape == (B, 4 * H1, 4 * W1, C)
    assert H1 >= 2 and W1 >= 2
    assert (H1 & (H1 - 1)) == 0 and (W1 & (W1 - 1)) == 0, "spatial dims must be powers of 2"
    H3, W3 = 4 * H1, 4 * W1

    u8 = _upsample_matrix(H1, W1, B)           # (B*H1*W1,  B*4*H1*W1)
    u16 = _upsample_matrix(2 * H1, 2 * W1, B)  # (B*H2*W2,  B*4*H2*W2)

    inputs = [_to_lane_major_padded(x1), _to_lane_major_padded(x2),
              _to_lane_major_padded(x3), u8, u16] + list(packed_params)

    kern = functools.partial(_aggregation_kernel, B=B, H1=H1, W1=W1,
                             roll_dir=_roll_pull_direction())
    vmem = pl.BlockSpec(memory_space=pltpu.MemorySpace.VMEM)
    out = pl.pallas_call(
        kern,
        out_shape=jax.ShapeDtypeStruct((1, B * H3 * W3), jnp.float32),
        in_specs=[vmem] * len(inputs),
        out_specs=vmem,
        compiler_params=pltpu.CompilerParams(vmem_limit_bytes=32 * 1024 * 1024),
    )(*inputs)
    # (1, B*H3*W3) -> NHWC (B, H3, W3, 1)  (channel-last equivalent of (B, 1, H3, W3)).
    return out.reshape(B, H3, W3, 1)


if __name__ == "__main__":
    channel = 4
    B = 2
    key = jax.random.PRNGKey(0)
    k1, k2, k3, kp = jax.random.split(key, 4)
    # Pyramid inputs (NHWC): x1 coarsest, x3 finest.
    x1 = jax.random.normal(k1, (B, 8, 8, channel), jnp.float32)
    x2 = jax.random.normal(k2, (B, 16, 16, channel), jnp.float32)
    x3 = jax.random.normal(k3, (B, 32, 32, channel), jnp.float32)

    params = init_params(kp, channel)
    packed = pack_params(params, channel)

    out = aggregation_forward(packed, x1, x2, x3)
    out = jax.block_until_ready(out)
    assert out.shape == (B, 32, 32, 1), out.shape
    assert bool(jnp.all(jnp.isfinite(out)))
    print("KERNEL_OK")
</pallas_src>

<mosaic_0001>
module attributes {stable_mosaic.version = 11 : i64} {
  func.func @kernel(%arg0: memref<8x256xf32, #tpu.memory_space<vmem>>, %arg1: memref<8x256xf32, #tpu.memory_space<vmem>>) attributes {dimension_semantics = [], scalar_prefetch = 0 : i64, scratch_operands = 0 : i64, tpu.core_type = #tpu.core_type<tc>} {
    %c0 = arith.constant 0 : index
    %c0_0 = arith.constant 0 : index
    %0 = vector.load %arg0[%c0, %c0_0] : memref<8x256xf32, #tpu.memory_space<vmem>>, vector<8x256xf32>
    %c1_i32 = arith.constant 1 : i32
    %1 = tpu.dynamic_rotate %0 by %c1_i32 dim 1 : vector<8x256xf32>, i32 -> vector<8x256xf32>
    %c0_1 = arith.constant 0 : index
    %c0_2 = arith.constant 0 : index
    %2 = vector.load %arg1[%c0_1, %c0_2] : memref<8x256xf32, #tpu.memory_space<vmem>>, vector<8x256xf32>
    tpu.vector_store %arg1[%c0_1, %c0_2], %1 {strides = array<i32>} : memref<8x256xf32, #tpu.memory_space<vmem>>, vector<8x256xf32>,
    return
  }
}

</mosaic_0001>

<bundles_post_ra>
// kernel: tpu_custom_call.1
= control target key start
LH: loop header
LB: loop body
LE: loop exit
PB: predicated region body
PF: predicated region fallthrough
CT: control target
= control target key end

     0   :  { %6 = vsyncpa [#allocation3], 0  ;;  %s115_s0 = inlined_call_operand.hbm [shape: f32[8,256], index: 0, kind: input, shape index: {}]   ;;  %s116_s1 = inlined_call_operand.hbm [shape: f32[8,256], index: 1, kind: output, shape index: {}]  }
   0x1   :  { %7 = vsyncpa [#allocation4], 0  ;;  %s96_s6 = smov [#allocation2]  }
   0x2   :  { %s14_s7 = sshll.u32 %s96_s6, 4  ;;  %s15_s7 = int_to_ptr.vmem [resolvable:$true] %s14_s7 }
   0x3   :  { %s60_s8 = scalar_lea.vmem %s15_s7, 256  ;;  %p65_p1 = scmp.lt.s32.totalorder %s15_s7, %s15_s7 }
   0x4   :  { %p61_p0 = scmp.ne.s32.totalorder %s15_s7, %s60_s8  ;;  %p66_p2 = scmp.lt.s32.totalorder %s60_s8, %s60_s8 }
   0x6   :  { %p67_p3 = por %p66_p2, %p65_p1 }
   0x8   :  { %p68_p4 = pnand %p67_p3, %p61_p0 }
   0xa   :  { %71 = shalt.err (!%p68_p4)
}
   0xb   :  { %17 = dma.hbm_to_vmem [thread:$0]  %s115_s0, 256, %s15_s7, [#allocation3]  }
   0xc   :  { %92 = dma.done.wait [#allocation3], 256  }
   0xd   :  { %93 = vsyncadd [#allocation3], 4294967040  ;;  %v21_v0 = vld [vmem:[#allocation2] sm:$0xff]  ;;  %s97_s11 = smov 1   ;;  %v22_v1 = vld [vmem:[#allocation2 + $0x8] sm:$0xff]  ;;  %v27_v2 = vlaneseq  ;;  %s98_s12 = smov [#allocation5]  }
   0xe   :  { %23 = vrot.lane.b32.xlu0 %v21_v0, %s97_s11  ;;  %s40_s13 = sshll.u32 %s98_s12, 4  ;;  %s41_s13 = int_to_ptr.vmem [resolvable:$true] %s40_s13 }
   0xf   :  { %v28_v3 = vand.u32 127, %v27_v2  ;;  %s72_s0 = scalar_lea.vmem %s41_s13, 256  ;;  %p77_p6 = scmp.lt.s32.totalorder %s41_s13, %s41_s13 }
  0x10   :  { %p73_p5 = scmp.ne.s32.totalorder %s41_s13, %s72_s0  ;;  %p78_p7 = scmp.lt.s32.totalorder %s72_s0, %s72_s0 }
  0x11   :  { %vm29_vm0 = vcmp.lt.s32.totalorder %v28_v3, 1 }
  0x12   :  { %25 = vrot.lane.b32.xlu0 %v22_v1, %s97_s11  ;;  %p79_p8 = por %p78_p7, %p77_p6 }
  0x14   :  { %p80_p9 = pnand %p79_p8, %p73_p5 }
  0x80   :  { %v24_v4 = vpop.permute.xlu0 %23 }
  0x84   :  { %v26_v5 = vpop.permute.xlu0 %25 }
  0x85   :  { %v30_v6 = vsel %vm29_vm0, %v24_v4, %v26_v5  ;;  %v31_v7 = vsel %vm29_vm0, %v26_v5, %v24_v4 }
  0x86   :  { %32 = vst [vmem:[#allocation5] sm:$0xff] %v31_v7  ;;  %33 = vst [vmem:[#allocation5 + $0x8] sm:$0xff] %v30_v6 }
  0x87   :  { %83 = shalt.err (!%p80_p9)
}
  0x88   :  { %43 = dma.vmem_to_hbm [thread:$0]  %s41_s13, 256, %s116_s1, [#allocation4]  }
  0x89   :  { %94 = dma.done.wait [#allocation4], 256  }
  0x8a   :  { %95 = vsyncadd [#allocation4], 4294967040 }
  0x8b   :  { %47 = vsyncpa [#allocation3], 1 }
  0x8c   :  { %48 = vsyncpa [#allocation4], 1 }

</bundles_post_ra>
